<compile_context>
chip_gen: v6e
topology: v6e:2x2x1
jax: 0.10.0
libtpu: 0.0.40
codegen_flags: <defaults>
</compile_context>

<pallas_src>
import functools

import jax
import jax.numpy as jnp
from jax import lax
from jax.experimental import pallas as pl
from jax.experimental.pallas import tpu as pltpu


def fcn_kernel(x_ref, w1_ref, b1_ref, w2_ref, b2_ref, o_ref, acc_ref, *, H, W):
    # x_ref : (1, cin_tile, P2)   flattened zero-padded input, bf16
    # w1_ref: (9, Cmid, cin_tile) conv1 3x3 weights (BN folded), tap-major, bf16
    # b1_ref: (Cmid, 1)           folded BN bias, f32
    # w2_ref: (Cout, Cmid)        conv2 1x1 weight, bf16
    # b2_ref: (Cout, 1)           conv2 bias, f32
    # o_ref : (1, Cout, L)        L = H*(W+2) window (2 garbage cols/row, cut in glue)
    # acc_ref: (Cmid, L) f32      conv1 accumulator across Cin tiles
    Wp = W + 2
    L = H * Wp
    ci = pl.program_id(1)

    @pl.when(ci == 0)
    def _():
        acc_ref[...] = jnp.zeros_like(acc_ref)

    # 3x3 conv = 9 shifted 1x1 convs; each tap reads a contiguous lane slice.
    for ky in range(3):
        for kx in range(3):
            t = ky * 3 + kx
            s = ky * Wp + kx                       # static lane offset
            x_tap = x_ref[0, :, s:s + L]           # (cin_tile, L) bf16
            acc_ref[...] += jnp.dot(
                w1_ref[t], x_tap, preferred_element_type=jnp.float32)

    @pl.when(ci == pl.num_programs(1) - 1)
    def _():
        # BN already folded into w1/b1; Dropout2d(0.1) is identity in eval mode.
        feat = jnp.maximum(acc_ref[...] + b1_ref[...], 0.0)          # (Cmid, L) f32
        out = jnp.dot(w2_ref[...], feat.astype(jnp.bfloat16),
                      preferred_element_type=jnp.float32) + b2_ref[...]
        o_ref[0] = out.astype(o_ref.dtype)


def fcnhead_forward(x, params):
    B, Cin, H, W = x.shape
    Hp, Wp = H + 2, W + 2
    L = H * Wp                 # output window length (includes 2 pad cols/row)
    P2 = Hp * Wp + 2           # flattened padded length (+2 so every tap slice is in range)

    w1 = params["w1"]                          # (Cmid, Cin, 3, 3)
    Cmid = w1.shape[0]
    Cout = params["w2"].shape[0]

    # --- glue: fold BN (eval, running stats) into conv1 ---
    gamma, beta = params["bn_gamma"], params["bn_beta"]
    mean, var, eps = params["bn_mean"], params["bn_var"], params["bn_eps"]
    scale = gamma / jnp.sqrt(var + eps)
    w1f = w1 * scale[:, None, None, None]                      # (Cmid, Cin, 3, 3)
    b1f = (beta - mean * scale)[:, None].astype(jnp.float32)   # (Cmid, 1)
    # tap-major weight stack: w1s[ky*3+kx, o, i] = w1f[o, i, ky, kx]
    w1s = jnp.transpose(w1f, (2, 3, 0, 1)).reshape(9, Cmid, Cin).astype(jnp.bfloat16)

    w2 = params["w2"].astype(jnp.bfloat16)                     # (Cout, Cmid)
    b2 = params["b2"][:, None].astype(jnp.float32)             # (Cout, 1)

    # --- glue: zero-pad spatially, flatten, cast MXU inputs to bf16 ---
    xpad = jnp.pad(x, ((0, 0), (0, 0), (1, 1), (1, 1)))
    xflat = xpad.reshape(B, Cin, Hp * Wp)
    xflat = jnp.pad(xflat, ((0, 0), (0, 0), (0, 2))).astype(jnp.bfloat16)  # (B, Cin, P2)

    # Cin tiling (reduction axis, last in grid) bounds VMEM at real FCN sizes
    # (Cin=2048): 256-channel tiles keep per-step blocks to a few MiB even on
    # v7x's 64 MiB VMEM, while weights stay resident across the reduction.
    if Cin > 256 and Cin % 256 == 0:
        cin_tile = 256
    else:
        cin_tile = Cin
    n_cin = Cin // cin_tile

    kernel = functools.partial(fcn_kernel, H=H, W=W)
    out_win = pl.pallas_call(
        kernel,
        out_shape=jax.ShapeDtypeStruct((B, Cout, L), jnp.float32),
        grid_spec=pltpu.PrefetchScalarGridSpec(
            num_scalar_prefetch=0,
            grid=(B, n_cin),
            in_specs=[
                pl.BlockSpec((1, cin_tile, P2), lambda b, c: (b, c, 0)),
                pl.BlockSpec((9, Cmid, cin_tile), lambda b, c: (0, 0, c)),
                pl.BlockSpec((Cmid, 1), lambda b, c: (0, 0)),
                pl.BlockSpec((Cout, Cmid), lambda b, c: (0, 0)),
                pl.BlockSpec((Cout, 1), lambda b, c: (0, 0)),
            ],
            out_specs=pl.BlockSpec((1, Cout, L), lambda b, c: (b, 0, 0)),
            scratch_shapes=[pltpu.VMEM((Cmid, L), jnp.float32)],
        ),
        compiler_params=pltpu.CompilerParams(
            dimension_semantics=("parallel", "arbitrary")),
    )(xflat, w1s, b1f, w2, b2)

    # --- glue: drop the 2 padding columns per row, restore (B, Cout, H, W) ---
    out = out_win.reshape(B, Cout, H, Wp)[:, :, :, :W]
    return out


def fcnhead_reference(x, params):
    """Pure-JAX (f32) reference mirroring the PyTorch FCNHead forward (eval)."""
    feat = lax.conv_general_dilated(
        x, params["w1"], window_strides=(1, 1), padding="SAME",
        dimension_numbers=("NCHW", "OIHW", "NCHW"))
    gamma, beta = params["bn_gamma"], params["bn_beta"]
    mean, var, eps = params["bn_mean"], params["bn_var"], params["bn_eps"]
    scale = (gamma / jnp.sqrt(var + eps))[None, :, None, None]
    feat = (feat - mean[None, :, None, None]) * scale + beta[None, :, None, None]
    feat = jnp.maximum(feat, 0.0)          # ReLU; Dropout2d is identity in eval
    out = jnp.einsum("oc,bchw->bohw", params["w2"], feat)
    out = out + params["b2"][None, :, None, None]
    return out


if __name__ == "__main__":
    B, Cin, Cout, H, W = 2, 32, 6, 16, 16
    Cmid = Cin // 4   # FCNHead inter_channels

    key = jax.random.PRNGKey(0)
    k_x, k_w1, k_w2, k_g, k_b, k_m, k_v = jax.random.split(key, 7)

    x = jax.random.normal(k_x, (B, Cin, H, W), dtype=jnp.float32)
    w1 = jax.random.normal(k_w1, (Cmid, Cin, 3, 3), dtype=jnp.float32) * (2.0 / (Cin * 9)) ** 0.5
    w2 = jax.random.normal(k_w2, (Cout, Cmid), dtype=jnp.float32) * (2.0 / Cmid) ** 0.5
    b2 = 0.01 * jnp.arange(Cout, dtype=jnp.float32)

    params = {
        "w1": w1,
        "w2": w2,
        "b2": b2,
        "bn_gamma": 1.0 + 0.1 * jax.random.normal(k_g, (Cmid,), dtype=jnp.float32),
        "bn_beta": 0.1 * jax.random.normal(k_b, (Cmid,), dtype=jnp.float32),
        "bn_mean": 0.1 * jax.random.normal(k_m, (Cmid,), dtype=jnp.float32),
        "bn_var": jnp.abs(1.0 + 0.1 * jax.random.normal(k_v, (Cmid,), dtype=jnp.float32)),
        "bn_eps": 1e-5,
    }

    out = fcnhead_forward(x, params)
    out = jax.block_until_ready(out)

    ref = fcnhead_reference(x, params)
    assert out.shape == (B, Cout, H, W)
    # bf16 MXU inputs (f32 accumulation) -> loosened tolerance vs f32 reference.
    max_diff = jnp.max(jnp.abs(out - ref))
    assert jnp.allclose(out, ref, atol=5e-2, rtol=5e-2), (
        f"Pallas kernel mismatch vs JAX reference, max abs diff = {max_diff}")

    print("KERNEL_OK")
</pallas_src>

<mosaic_0001>
module attributes {stable_mosaic.version = 11 : i64} {
  func.func @fcn_kernel(%arg0: i32, %arg1: i32, %arg2: memref<1x32x326xbf16, #tpu.memory_space<vmem>>, %arg3: memref<9x8x32xbf16, #tpu.memory_space<vmem>>, %arg4: memref<8x1xf32, #tpu.memory_space<vmem>>, %arg5: memref<6x8xbf16, #tpu.memory_space<vmem>>, %arg6: memref<6x1xf32, #tpu.memory_space<vmem>>, %arg7: memref<1x6x288xf32, #tpu.memory_space<vmem>>, %arg8: memref<8x288xf32, #tpu.memory_space<vmem>>) attributes {dimension_semantics = [#tpu.dimension_semantics<parallel>, #tpu.dimension_semantics<arbitrary>], iteration_bounds = array<i64: 2, 1>, scalar_prefetch = 0 : i64, scratch_operands = 1 : i64, tpu.core_type = #tpu.core_type<tc>, window_params = [{transform_indices = @transform_0, window_bounds = array<i64: 1, 32, 326>}, {transform_indices = @transform_1, window_bounds = array<i64: 9, 8, 32>}, {pipeline_mode = #tpu.pipeline_mode<synchronous>, transform_indices = @transform_2, window_bounds = array<i64: 8, 1>}, {pipeline_mode = #tpu.pipeline_mode<synchronous>, transform_indices = @transform_3, window_bounds = array<i64: 6, 8>}, {pipeline_mode = #tpu.pipeline_mode<synchronous>, transform_indices = @transform_4, window_bounds = array<i64: 6, 1>}, {transform_indices = @transform_5, window_bounds = array<i64: 1, 6, 288>}]} {
    %c0_i32 = arith.constant 0 : i32
    %0 = arith.cmpi eq, %arg1, %c0_i32 : i32
    %1 = arith.extui %0 : i1 to i32
    %c0_i32_0 = arith.constant 0 : i32
    %2 = arith.cmpi ne, %1, %c0_i32_0 : i32
    scf.if %2 {
      %cst_86 = arith.constant 0.000000e+00 : f32
      %78 = vector.broadcast %cst_86 : f32 to vector<8x288xf32>
      %c0_87 = arith.constant 0 : index
      %c0_88 = arith.constant 0 : index
      %79 = vector.load %arg8[%c0_87, %c0_88] : memref<8x288xf32, #tpu.memory_space<vmem>>, vector<8x288xf32>
      tpu.vector_store %arg8[%c0_87, %c0_88], %78 {strides = array<i32>} : memref<8x288xf32, #tpu.memory_space<vmem>>, vector<8x288xf32>,
    } else {
    }
    %c0 = arith.constant 0 : index
    %c0_1 = arith.constant 0 : index
    %c0_2 = arith.constant 0 : index
    %3 = vector.load %arg2[%c0, %c0_1, %c0_2] : memref<1x32x326xbf16, #tpu.memory_space<vmem>>, vector<1x32x288xbf16>
    %4 = vector.shape_cast %3 : vector<1x32x288xbf16> to vector<32x288xbf16>
    %c0_3 = arith.constant 0 : index
    %c0_4 = arith.constant 0 : index
    %5 = vector.load %arg8[%c0_3, %c0_4] : memref<8x288xf32, #tpu.memory_space<vmem>>, vector<8x288xf32>
    %c0_5 = arith.constant 0 : index
    %c0_6 = arith.constant 0 : index
    %c0_7 = arith.constant 0 : index
    %6 = vector.load %arg3[%c0_5, %c0_6, %c0_7] : memref<9x8x32xbf16, #tpu.memory_space<vmem>>, vector<1x8x32xbf16>
    %7 = vector.shape_cast %6 : vector<1x8x32xbf16> to vector<8x32xbf16>
    %cst = arith.constant dense<0.000000e+00> : vector<8x288xf32>
    %8 = tpu.matmul %7, %4, %cst {dimension_numbers = #tpu.dot_dimension_numbers<[1], [0], [0], [1], [0, 0, 1, 1], [], []>} : vector<8x32xbf16>, vector<32x288xbf16>, vector<8x288xf32> -> vector<8x288xf32>
    %9 = arith.addf %5, %8 : vector<8x288xf32>
    %c0_8 = arith.constant 0 : index
    %c0_9 = arith.constant 0 : index
    %10 = vector.load %arg8[%c0_8, %c0_9] : memref<8x288xf32, #tpu.memory_space<vmem>>, vector<8x288xf32>
    tpu.vector_store %arg8[%c0_8, %c0_9], %9 {strides = array<i32>} : memref<8x288xf32, #tpu.memory_space<vmem>>, vector<8x288xf32>,
    %c0_10 = arith.constant 0 : index
    %c0_11 = arith.constant 0 : index
    %c1 = arith.constant 1 : index
    %11 = vector.load %arg2[%c0_10, %c0_11, %c1] : memref<1x32x326xbf16, #tpu.memory_space<vmem>>, vector<1x32x288xbf16>
    %12 = vector.shape_cast %11 : vector<1x32x288xbf16> to vector<32x288xbf16>
    %c0_12 = arith.constant 0 : index
    %c0_13 = arith.constant 0 : index
    %13 = vector.load %arg8[%c0_12, %c0_13] : memref<8x288xf32, #tpu.memory_space<vmem>>, vector<8x288xf32>
    %c1_14 = arith.constant 1 : index
    %c0_15 = arith.constant 0 : index
    %c0_16 = arith.constant 0 : index
    %14 = vector.load %arg3[%c1_14, %c0_15, %c0_16] : memref<9x8x32xbf16, #tpu.memory_space<vmem>>, vector<1x8x32xbf16>
    %15 = vector.shape_cast %14 : vector<1x8x32xbf16> to vector<8x32xbf16>
    %cst_17 = arith.constant dense<0.000000e+00> : vector<8x288xf32>
    %16 = tpu.matmul %15, %12, %cst_17 {dimension_numbers = #tpu.dot_dimension_numbers<[1], [0], [0], [1], [0, 0, 1, 1], [], []>} : vector<8x32xbf16>, vector<32x288xbf16>, vector<8x288xf32> -> vector<8x288xf32>
    %17 = arith.addf %13, %16 : vector<8x288xf32>
    %c0_18 = arith.constant 0 : index
    %c0_19 = arith.constant 0 : index
    %18 = vector.load %arg8[%c0_18, %c0_19] : memref<8x288xf32, #tpu.memory_space<vmem>>, vector<8x288xf32>
    tpu.vector_store %arg8[%c0_18, %c0_19], %17 {strides = array<i32>} : memref<8x288xf32, #tpu.memory_space<vmem>>, vector<8x288xf32>,
    %c0_20 = arith.constant 0 : index
    %c0_21 = arith.constant 0 : index
    %c2 = arith.constant 2 : index
    %19 = vector.load %arg2[%c0_20, %c0_21, %c2] : memref<1x32x326xbf16, #tpu.memory_space<vmem>>, vector<1x32x288xbf16>
    %20 = vector.shape_cast %19 : vector<1x32x288xbf16> to vector<32x288xbf16>
    %c0_22 = arith.constant 0 : index
    %c0_23 = arith.constant 0 : index
    %21 = vector.load %arg8[%c0_22, %c0_23] : memref<8x288xf32, #tpu.memory_space<vmem>>, vector<8x288xf32>
    %c2_24 = arith.constant 2 : index
    %c0_25 = arith.constant 0 : index
    %c0_26 = arith.constant 0 : index
    %22 = vector.load %arg3[%c2_24, %c0_25, %c0_26] : memref<9x8x32xbf16, #tpu.memory_space<vmem>>, vector<1x8x32xbf16>
    %23 = vector.shape_cast %22 : vector<1x8x32xbf16> to vector<8x32xbf16>
    %cst_27 = arith.constant dense<0.000000e+00> : vector<8x288xf32>
    %24 = tpu.matmul %23, %20, %cst_27 {dimension_numbers = #tpu.dot_dimension_numbers<[1], [0], [0], [1], [0, 0, 1, 1], [], []>} : vector<8x32xbf16>, vector<32x288xbf16>, vector<8x288xf32> -> vector<8x288xf32>
    %25 = arith.addf %21, %24 : vector<8x288xf32>
    %c0_28 = arith.constant 0 : index
    %c0_29 = arith.constant 0 : index
    %26 = vector.load %arg8[%c0_28, %c0_29] : memref<8x288xf32, #tpu.memory_space<vmem>>, vector<8x288xf32>
    tpu.vector_store %arg8[%c0_28, %c0_29], %25 {strides = array<i32>} : memref<8x288xf32, #tpu.memory_space<vmem>>, vector<8x288xf32>,
    %c0_30 = arith.constant 0 : index
    %c0_31 = arith.constant 0 : index
    %c18 = arith.constant 18 : index
    %27 = vector.load %arg2[%c0_30, %c0_31, %c18] : memref<1x32x326xbf16, #tpu.memory_space<vmem>>, vector<1x32x288xbf16>
    %28 = vector.shape_cast %27 : vector<1x32x288xbf16> to vector<32x288xbf16>
    %c0_32 = arith.constant 0 : index
    %c0_33 = arith.constant 0 : index
    %29 = vector.load %arg8[%c0_32, %c0_33] : memref<8x288xf32, #tpu.memory_space<vmem>>, vector<8x288xf32>
    %c3 = arith.constant 3 : index
    %c0_34 = arith.constant 0 : index
    %c0_35 = arith.constant 0 : index
    %30 = vector.load %arg3[%c3, %c0_34, %c0_35] : memref<9x8x32xbf16, #tpu.memory_space<vmem>>, vector<1x8x32xbf16>
    %31 = vector.shape_cast %30 : vector<1x8x32xbf16> to vector<8x32xbf16>
    %cst_36 = arith.constant dense<0.000000e+00> : vector<8x288xf32>
    %32 = tpu.matmul %31, %28, %cst_36 {dimension_numbers = #tpu.dot_dimension_numbers<[1], [0], [0], [1], [0, 0, 1, 1], [], []>} : vector<8x32xbf16>, vector<32x288xbf16>, vector<8x288xf32> -> vector<8x288xf32>
    %33 = arith.addf %29, %32 : vector<8x288xf32>
    %c0_37 = arith.constant 0 : index
    %c0_38 = arith.constant 0 : index
    %34 = vector.load %arg8[%c0_37, %c0_38] : memref<8x288xf32, #tpu.memory_space<vmem>>, vector<8x288xf32>
    tpu.vector_store %arg8[%c0_37, %c0_38], %33 {strides = array<i32>} : memref<8x288xf32, #tpu.memory_space<vmem>>, vector<8x288xf32>,
    %c0_39 = arith.constant 0 : index
    %c0_40 = arith.constant 0 : index
    %c19 = arith.constant 19 : index
    %35 = vector.load %arg2[%c0_39, %c0_40, %c19] : memref<1x32x326xbf16, #tpu.memory_space<vmem>>, vector<1x32x288xbf16>
    %36 = vector.shape_cast %35 : vector<1x32x288xbf16> to vector<32x288xbf16>
    %c0_41 = arith.constant 0 : index
    %c0_42 = arith.constant 0 : index
    %37 = vector.load %arg8[%c0_41, %c0_42] : memref<8x288xf32, #tpu.memory_space<vmem>>, vector<8x288xf32>
    %c4 = arith.constant 4 : index
    %c0_43 = arith.constant 0 : index
    %c0_44 = arith.constant 0 : index
    %38 = vector.load %arg3[%c4, %c0_43, %c0_44] : memref<9x8x32xbf16, #tpu.memory_space<vmem>>, vector<1x8x32xbf16>
    %39 = vector.shape_cast %38 : vector<1x8x32xbf16> to vector<8x32xbf16>
    %cst_45 = arith.constant dense<0.000000e+00> : vector<8x288xf32>
    %40 = tpu.matmul %39, %36, %cst_45 {dimension_numbers = #tpu.dot_dimension_numbers<[1], [0], [0], [1], [0, 0, 1, 1], [], []>} : vector<8x32xbf16>, vector<32x288xbf16>, vector<8x288xf32> -> vector<8x288xf32>
    %41 = arith.addf %37, %40 : vector<8x288xf32>
    %c0_46 = arith.constant 0 : index
    %c0_47 = arith.constant 0 : index
    %42 = vector.load %arg8[%c0_46, %c0_47] : memref<8x288xf32, #tpu.memory_space<vmem>>, vector<8x288xf32>
    tpu.vector_store %arg8[%c0_46, %c0_47], %41 {strides = array<i32>} : memref<8x288xf32, #tpu.memory_space<vmem>>, vector<8x288xf32>,
    %c0_48 = arith.constant 0 : index
    %c0_49 = arith.constant 0 : index
    %c20 = arith.constant 20 : index
    %43 = vector.load %arg2[%c0_48, %c0_49, %c20] : memref<1x32x326xbf16, #tpu.memory_space<vmem>>, vector<1x32x288xbf16>
    %44 = vector.shape_cast %43 : vector<1x32x288xbf16> to vector<32x288xbf16>
    %c0_50 = arith.constant 0 : index
    %c0_51 = arith.constant 0 : index
    %45 = vector.load %arg8[%c0_50, %c0_51] : memref<8x288xf32, #tpu.memory_space<vmem>>, vector<8x288xf32>
    %c5 = arith.constant 5 : index
    %c0_52 = arith.constant 0 : index
    %c0_53 = arith.constant 0 : index
    %46 = vector.load %arg3[%c5, %c0_52, %c0_53] : memref<9x8x32xbf16, #tpu.memory_space<vmem>>, vector<1x8x32xbf16>
    %47 = vector.shape_cast %46 : vector<1x8x32xbf16> to vector<8x32xbf16>
    %cst_54 = arith.constant dense<0.000000e+00> : vector<8x288xf32>
    %48 = tpu.matmul %47, %44, %cst_54 {dimension_numbers = #tpu.dot_dimension_numbers<[1], [0], [0], [1], [0, 0, 1, 1], [], []>} : vector<8x32xbf16>, vector<32x288xbf16>, vector<8x288xf32> -> vector<8x288xf32>
    %49 = arith.addf %45, %48 : vector<8x288xf32>
    %c0_55 = arith.constant 0 : index
    %c0_56 = arith.constant 0 : index
    %50 = vector.load %arg8[%c0_55, %c0_56] : memref<8x288xf32, #tpu.memory_space<vmem>>, vector<8x288xf32>
    tpu.vector_store %arg8[%c0_55, %c0_56], %49 {strides = array<i32>} : memref<8x288xf32, #tpu.memory_space<vmem>>, vector<8x288xf32>,
    %c0_57 = arith.constant 0 : index
    %c0_58 = arith.constant 0 : index
    %c36 = arith.constant 36 : index
    %51 = vector.load %arg2[%c0_57, %c0_58, %c36] : memref<1x32x326xbf16, #tpu.memory_space<vmem>>, vector<1x32x288xbf16>
    %52 = vector.shape_cast %51 : vector<1x32x288xbf16> to vector<32x288xbf16>
    %c0_59 = arith.constant 0 : index
    %c0_60 = arith.constant 0 : index
    %53 = vector.load %arg8[%c0_59, %c0_60] : memref<8x288xf32, #tpu.memory_space<vmem>>, vector<8x288xf32>
    %c6 = arith.constant 6 : index
    %c0_61 = arith.constant 0 : index
    %c0_62 = arith.constant 0 : index
    %54 = vector.load %arg3[%c6, %c0_61, %c0_62] : memref<9x8x32xbf16, #tpu.memory_space<vmem>>, vector<1x8x32xbf16>
    %55 = vector.shape_cast %54 : vector<1x8x32xbf16> to vector<8x32xbf16>
    %cst_63 = arith.constant dense<0.000000e+00> : vector<8x288xf32>
    %56 = tpu.matmul %55, %52, %cst_63 {dimension_numbers = #tpu.dot_dimension_numbers<[1], [0], [0], [1], [0, 0, 1, 1], [], []>} : vector<8x32xbf16>, vector<32x288xbf16>, vector<8x288xf32> -> vector<8x288xf32>
    %57 = arith.addf %53, %56 : vector<8x288xf32>
    %c0_64 = arith.constant 0 : index
    %c0_65 = arith.constant 0 : index
    %58 = vector.load %arg8[%c0_64, %c0_65] : memref<8x288xf32, #tpu.memory_space<vmem>>, vector<8x288xf32>
    tpu.vector_store %arg8[%c0_64, %c0_65], %57 {strides = array<i32>} : memref<8x288xf32, #tpu.memory_space<vmem>>, vector<8x288xf32>,
    %c0_66 = arith.constant 0 : index
    %c0_67 = arith.constant 0 : index
    %c37 = arith.constant 37 : index
    %59 = vector.load %arg2[%c0_66, %c0_67, %c37] : memref<1x32x326xbf16, #tpu.memory_space<vmem>>, vector<1x32x288xbf16>
    %60 = vector.shape_cast %59 : vector<1x32x288xbf16> to vector<32x288xbf16>
    %c0_68 = arith.constant 0 : index
    %c0_69 = arith.constant 0 : index
    %61 = vector.load %arg8[%c0_68, %c0_69] : memref<8x288xf32, #tpu.memory_space<vmem>>, vector<8x288xf32>
    %c7 = arith.constant 7 : index
    %c0_70 = arith.constant 0 : index
    %c0_71 = arith.constant 0 : index
    %62 = vector.load %arg3[%c7, %c0_70, %c0_71] : memref<9x8x32xbf16, #tpu.memory_space<vmem>>, vector<1x8x32xbf16>
    %63 = vector.shape_cast %62 : vector<1x8x32xbf16> to vector<8x32xbf16>
    %cst_72 = arith.constant dense<0.000000e+00> : vector<8x288xf32>
    %64 = tpu.matmul %63, %60, %cst_72 {dimension_numbers = #tpu.dot_dimension_numbers<[1], [0], [0], [1], [0, 0, 1, 1], [], []>} : vector<8x32xbf16>, vector<32x288xbf16>, vector<8x288xf32> -> vector<8x288xf32>
    %65 = arith.addf %61, %64 : vector<8x288xf32>
    %c0_73 = arith.constant 0 : index
    %c0_74 = arith.constant 0 : index
    %66 = vector.load %arg8[%c0_73, %c0_74] : memref<8x288xf32, #tpu.memory_space<vmem>>, vector<8x288xf32>
    tpu.vector_store %arg8[%c0_73, %c0_74], %65 {strides = array<i32>} : memref<8x288xf32, #tpu.memory_space<vmem>>, vector<8x288xf32>,
    %c0_75 = arith.constant 0 : index
    %c0_76 = arith.constant 0 : index
    %c38 = arith.constant 38 : index
    %67 = vector.load %arg2[%c0_75, %c0_76, %c38] : memref<1x32x326xbf16, #tpu.memory_space<vmem>>, vector<1x32x288xbf16>
    %68 = vector.shape_cast %67 : vector<1x32x288xbf16> to vector<32x288xbf16>
    %c0_77 = arith.constant 0 : index
    %c0_78 = arith.constant 0 : index
    %69 = vector.load %arg8[%c0_77, %c0_78] : memref<8x288xf32, #tpu.memory_space<vmem>>, vector<8x288xf32>
    %c8 = arith.constant 8 : index
    %c0_79 = arith.constant 0 : index
    %c0_80 = arith.constant 0 : index
    %70 = vector.load %arg3[%c8, %c0_79, %c0_80] : memref<9x8x32xbf16, #tpu.memory_space<vmem>>, vector<1x8x32xbf16>
    %71 = vector.shape_cast %70 : vector<1x8x32xbf16> to vector<8x32xbf16>
    %cst_81 = arith.constant dense<0.000000e+00> : vector<8x288xf32>
    %72 = tpu.matmul %71, %68, %cst_81 {dimension_numbers = #tpu.dot_dimension_numbers<[1], [0], [0], [1], [0, 0, 1, 1], [], []>} : vector<8x32xbf16>, vector<32x288xbf16>, vector<8x288xf32> -> vector<8x288xf32>
    %73 = arith.addf %69, %72 : vector<8x288xf32>
    %c0_82 = arith.constant 0 : index
    %c0_83 = arith.constant 0 : index
    %74 = vector.load %arg8[%c0_82, %c0_83] : memref<8x288xf32, #tpu.memory_space<vmem>>, vector<8x288xf32>
    tpu.vector_store %arg8[%c0_82, %c0_83], %73 {strides = array<i32>} : memref<8x288xf32, #tpu.memory_space<vmem>>, vector<8x288xf32>,
    %c0_i32_84 = arith.constant 0 : i32
    %75 = arith.cmpi eq, %arg1, %c0_i32_84 : i32
    %76 = arith.extui %75 : i1 to i32
    %c0_i32_85 = arith.constant 0 : i32
    %77 = arith.cmpi ne, %76, %c0_i32_85 : i32
    scf.if %77 {
      %c0_86 = arith.constant 0 : index
      %c0_87 = arith.constant 0 : index
      %78 = vector.load %arg8[%c0_86, %c0_87] : memref<8x288xf32, #tpu.memory_space<vmem>>, vector<8x288xf32>
      %c0_88 = arith.constant 0 : index
      %c0_89 = arith.constant 0 : index
      %79 = vector.load %arg4[%c0_88, %c0_89] : memref<8x1xf32, #tpu.memory_space<vmem>>, vector<8x1xf32>
      %80 = vector.broadcast %79 : vector<8x1xf32> to vector<8x288xf32>
      %81 = arith.addf %78, %80 : vector<8x288xf32>
      %cst_90 = arith.constant 0.000000e+00 : f32
      %82 = vector.broadcast %cst_90 : f32 to vector<8x288xf32>
      %83 = arith.maximumf %81, %82 : vector<8x288xf32>
      %c0_91 = arith.constant 0 : index
      %c0_92 = arith.constant 0 : index
      %84 = vector.load %arg5[%c0_91, %c0_92] : memref<6x8xbf16, #tpu.memory_space<vmem>>, vector<6x8xbf16>
      %85 = arith.truncf %83 : vector<8x288xf32> to vector<8x288xbf16>
      %cst_93 = arith.constant dense<0.000000e+00> : vector<6x288xf32>
      %86 = tpu.matmul %84, %85, %cst_93 {dimension_numbers = #tpu.dot_dimension_numbers<[1], [0], [0], [1], [0, 0, 1, 1], [], []>} : vector<6x8xbf16>, vector<8x288xbf16>, vector<6x288xf32> -> vector<6x288xf32>
      %c0_94 = arith.constant 0 : index
      %c0_95 = arith.constant 0 : index
      %87 = vector.load %arg6[%c0_94, %c0_95] : memref<6x1xf32, #tpu.memory_space<vmem>>, vector<6x1xf32>
      %88 = vector.broadcast %87 : vector<6x1xf32> to vector<6x288xf32>
      %89 = arith.addf %86, %88 : vector<6x288xf32>
      %c0_96 = arith.constant 0 : index
      %c0_97 = arith.constant 0 : index
      %c0_98 = arith.constant 0 : index
      %90 = vector.load %arg7[%c0_96, %c0_97, %c0_98] : memref<1x6x288xf32, #tpu.memory_space<vmem>>, vector<1x6x288xf32>
      %91 = vector.shape_cast %90 : vector<1x6x288xf32> to vector<6x288xf32>
      %92 = vector.shape_cast %89 : vector<6x288xf32> to vector<1x6x288xf32>
      tpu.vector_store %arg7[%c0_96, %c0_97, %c0_98], %92 {strides = array<i32>} : memref<1x6x288xf32, #tpu.memory_space<vmem>>, vector<1x6x288xf32>,
    } else {
    }
    return
  }
  func.func @transform_0(%arg0: i32, %arg1: i32) -> (i32, i32, i32) {
    %c0_i32 = arith.constant 0 : i32
    %c0_i32_0 = arith.constant 0 : i32
    return %arg0, %arg1, %c0_i32 : i32, i32, i32
  }
  func.func @transform_1(%arg0: i32, %arg1: i32) -> (i32, i32, i32) {
    %c0_i32 = arith.constant 0 : i32
    %c0_i32_0 = arith.constant 0 : i32
    %c0_i32_1 = arith.constant 0 : i32
    return %c0_i32, %c0_i32_0, %arg1 : i32, i32, i32
  }
  func.func @transform_2(%arg0: i32, %arg1: i32) -> (i32, i32) {
    %c0_i32 = arith.constant 0 : i32
    %c0_i32_0 = arith.constant 0 : i32
    %c0_i32_1 = arith.constant 0 : i32
    return %c0_i32, %c0_i32_0 : i32, i32
  }
  func.func @transform_3(%arg0: i32, %arg1: i32) -> (i32, i32) {
    %c0_i32 = arith.constant 0 : i32
    %c0_i32_0 = arith.constant 0 : i32
    %c0_i32_1 = arith.constant 0 : i32
    return %c0_i32, %c0_i32_0 : i32, i32
  }
  func.func @transform_4(%arg0: i32, %arg1: i32) -> (i32, i32) {
    %c0_i32 = arith.constant 0 : i32
    %c0_i32_0 = arith.constant 0 : i32
    %c0_i32_1 = arith.constant 0 : i32
    return %c0_i32, %c0_i32_0 : i32, i32
  }
  func.func @transform_5(%arg0: i32, %arg1: i32) -> (i32, i32, i32) {
    %c0_i32 = arith.constant 0 : i32
    %c0_i32_0 = arith.constant 0 : i32
    %c0_i32_1 = arith.constant 0 : i32
    return %arg0, %c0_i32, %c0_i32_0 : i32, i32, i32
  }
}

</mosaic_0001>

<bundles_post_ra>
// kernel: tpu_custom_call.1
= control target key start
LH: loop header
LB: loop body
LE: loop exit
PB: predicated region body
PF: predicated region fallthrough
CT: control target
= control target key end

     0   :  { %10 = vsyncpa [#allocation4], 0  ;;  %s2635_s0 = inlined_call_operand.hbm [shape: bf16[2,32,326], index: 0, kind: input, shape index: {}]   ;;  %s2636_s1 = inlined_call_operand.hbm [shape: bf16[9,8,32], index: 1, kind: input, shape index: {}]   ;;  %s2637_s2 = inlined_call_operand.vmem [shape: f32[8,1], index: 2, kind: input, shape index: {}]   ;;  %s2638_s3 = inlined_call_operand.vmem [shape: bf16[6,8], index: 3, kind: input, shape index: {}]   ;;  %s2639_s4 = inlined_call_operand.vmem [shape: f32[6,1], index: 4, kind: input, shape index: {}]   ;;  %s2640_s5 = inlined_call_operand.vmem [shape: f32[2,6,288], index: 5, kind: output, shape index: {}]  }
   0x1   :  { %12 = vsyncpa [#allocation4 + $0x1], 0 }
   0x2   :  { %13 = vsyncpa [#allocation6], 0  ;;  %s2323_s18 = smov 0   ;;  %s2325_s19 = smov 0  }
   0x3   :  { %s2327_s20 = smov 0   ;;  %s2329_s21 = smov 0  }
   0x4   :  { %s2331_s22 = smov 0   ;;  %s2333_s23 = smov 0  }
   0x5 LB: > { %s1862_s24 = sadd.s32 4294967295, %s2274_s23   ;;  %p53_p0 = scmp.ne.s32.totalorder %s2258_s19, %s2254_s18  ;;  %s2274_s23 = sphi %s2333_s23, %s19_s23   ;;  %s2270_s22 = sphi %s2331_s22, %s2650_s22   ;;  %s2266_s21 = sphi %s2329_s21, %s2649_s21   ;;  %s2262_s20 = sphi %s2327_s20, %s2648_s20   ;;  %s2258_s19 = sphi %s2325_s19, %s2647_s19   ;;  %s2254_s18 = sphi %s2323_s18, %s2646_s18  }
   0x6   : > { %p2353_p1 = scmp.eq.s32.totalorder %s1862_s24, 0  ;;  %p1864_p2 = scmp.ge.s32.totalorder %s2274_s23, 1 }
   0x7   : > { %p179_p3 = scmp.lt.s32.totalorder %s2274_s23, 3  ;;  %s2276_s28 = smov [#allocation5]  }
   0x8   : > { %p2361_p4 = por %p2353_p1, %p53_p0  ;;  %s193_s29 = sshll.u32 %s2276_s28, 4  ;;  %s194_s29 = int_to_ptr.vmem [resolvable:$true] %s193_s29 }
   0x9   : > { %p2365_p5 = pnand %p1864_p2, %p179_p3  ;;  %s31_s6 = sadd.s32 1, %s2270_s22 }
   0xa   : > { %s2177_s7 = scalar_lea.vmem %s194_s29, 576  ;;  %p2185_p12 = scmp.lt.s32.totalorder %s194_s29, %s194_s29 }
   0xb   : > { %p2065_p6 = pneg %p2365_p5  ;;  %p2178_p9 = scmp.ne.s32.totalorder %s194_s29, %s2177_s7 }
   0xc   : > { %p2186_p13 = scmp.lt.s32.totalorder %s2177_s7, %s2177_s7 }
   0xd   : > { %p2373_p7 = pnand %p2065_p6, %p2353_p1 }
   0xe   : > { %p2187_p0 = por %p2186_p13, %p2185_p12 }
   0xf   : > { %p2168_p8 = pneg %p2373_p7 }
  0x11   : > { %p2180_p10 = pnand %p2178_p9, %p2168_p8 }
  0x13   : > { %p2181_p11 = pneg %p2180_p10 }
  0x15   : > { %p2188_p2 = pnand %p2187_p0, %p2181_p11 }
  0x17   : > { %2191 = shalt.err (!%p2188_p2)
}
  0x18   : > { %s2277_s8 = smov 64   ;;  %s2278_s9 = smov 4  }
  0x19   : > { %2068 = dma.hbm_to_vmem [thread:$0]  (!%p2373_p7), %s2636_s1, 576, %s194_s29, [#allocation6], %s2277_s8, %s2277_s8, %s2278_s9  }
  0x1a   : > { %p33_p3 = scmp.ge.s32.totalorder %s31_s6, 2  ;;  %s40_s12 = sadd.s32 1, %s2262_s20 }
  0x1b   : > { %p47_p6 = scmp.ne.s32.totalorder %s2262_s20, %s2258_s19  ;;  %p48_p8 = scmp.eq.s32.totalorder %s2274_s23, 0 }
  0x1c   : > { %s2652_s6 = smov (%p33_p3, %s31_s6), 0  ;;  %p2074_p10 = scmp.lt.s32.totalorder %s2274_s23, 2 }
  0x1d   : > { %p49_p9 = por %p48_p8, %p47_p6  ;;  %s35_s13 = ssub.s32 %s2270_s22, %s2652_s6 }
  0x1e   : > { %s216_s14 = sand.u32 1, %s2262_s20   ;;  %p38_p11 = scmp.eq.s32.totalorder %s35_s13, 0 }
  0x1f   : > { %s2055_s15 = smul.u32 48, %s216_s14  ;;  %p2395_p12 = pnand %p2074_p10, %p49_p9 }
  0x20   : > { %s2400_s17 = scalar_select %p38_p11, %s2262_s20, %s40_s12  }
  0x21   : > { %s2056_s18 = smul.u32 768, %s2270_s22  ;;  %s220_s24 = scalar_lea.vmem [#allocation3], %s2055_s15 }
  0x22   : > { %s230_s28 = sshll.u32 %s220_s24, 4  ;;  %s217_s8 = scalar_lea.sflag [#allocation4], %s216_s14  ;;  %s231_s28 = int_to_ptr.vmem [resolvable:$true] %s230_s28 }
  0x23   : > { %s229_s7 = scalar_lea.hbm %s2635_s0, %s2056_s18  ;;  %p2194_p7 = pneg %p2395_p12 }
  0x24   : > { %s2205_s9 = scalar_lea.vmem %s231_s28, 768  ;;  %s2279_s10 = smov [#allocation3]  }
  0x25   : > { %p2206_p13 = scmp.ne.s32.totalorder %s231_s28, %s2205_s9  ;;  %s2210_s11 = sshll.u32 %s2279_s10, 4  ;;  %s2211_s11 = int_to_ptr.vmem [resolvable:$false] %s2210_s11 }
  0x26   : > { %s2212_s12 = scalar_lea.vmem %s2211_s11, 1536  ;;  %p2213_p3 = scmp.lt.s32.totalorder %s231_s28, %s2211_s11 }
  0x27   : > { %p2208_p0 = pnand %p2206_p13, %p2194_p7  ;;  %p2214_p6 = scmp.lt.s32.totalorder %s2212_s12, %s2205_s9 }
  0x29   : > { %p2209_p2 = pneg %p2208_p0  ;;  %p2215_p8 = por %p2214_p6, %p2213_p3 }
  0x2b   : > { %p2216_p9 = pnand %p2215_p8, %p2209_p2 }
  0x2d   : > { %2219 = shalt.err (!%p2216_p9)
}
  0x2e   : > { %s2280_s13 = smov 192   ;;  %s2281_s15 = smov 12  }
  0x2f   : > { %2072 = dma.hbm_to_vmem [thread:$0]  (!%p2395_p12), %s229_s7, 768, %s231_s28, %s217_s8, %s2280_s13, %s2280_s13, %s2281_s15  }
  0x30   : > { %242 = sbr.rel (%p2365_p5) target bundleno = 681 (0x2a9), region = 40  ;;  %s244_s14 = sand.u32 (!%p2365_p5), 1, %s2258_s19  }
  0x31   : > { %s2057_s18 = smul.u32 (!%p2365_p5), 48, %s244_s14  ;;  %s245_s24 = scalar_lea.sflag (!%p2365_p5), [#allocation4], %s244_s14 }
  0x33   : > { %s2413_s29 = scalar_lea.vmem (!%p2365_p5), [#allocation3], %s2057_s18 }
  0x35   : > { %2245 = dma.done.wait (%p2361_p4), %s245_s24, 768  }
  0x36   : > { %2247 = vsyncadd (%p2361_p4), %s245_s24, 4294966528 }
  0x37   : > { %2249 = dma.done.wait (%p2353_p1), [#allocation6], 576  }
  0x38   : > { %2251 = vsyncadd (%p2353_p1), [#allocation6], 4294966720  ;;  %v2282_v0 = vmov 0.0   ;;  %vm292_vm0 = vcmask 261120   ;;  %vm2283_vm1 = vmmov 0   ;;  %v2284_v1 = vmov 0  }
  0x39   : > { %1977 = vmatprep.subr.bf16.mxu1 %v2282_v0  ;;  %1981 = vmatprep.mubr.msk.bf16.mxu1 %vm2283_vm1, %v2282_v0  ;;  %293 = vst.msk [vmem:[#allocation2 + $0x10] sm:$0xff] %vm292_vm0, %v2282_v0  ;;  %v2432_v2 = vld [vmem:[%s2413_s29 + $0x1c] ss:$12 sps:$4 sm:$0xff]   ;;  %v2435_v3 = vld [vmem:[%s2413_s29 + $0x18] ss:$12 sps:$4 sm:$0xff]   ;;  %s2285_s25 = smov 127  }
  0x3a   : > { %374 = vmatprep.mubr.bf16.mxu0 %v2284_v1  ;;  %2140 = vset.pattern.permute.xlu0 %v2284_v1  ;;  %v2145_v4 = vld [vmem:[%s2413_s29 + $0x20] ss:$12 sps:$4 sm:$0xff]   ;;  %v2442_v5 = vld [vmem:[%s2413_s29 + $0x4] ss:$12 sps:$4 sm:$0xff]   ;;  %v2148_v7 = vld [vmem:[%s2413_s29 + $0x8] ss:$12 sps:$4 sm:$0xff]  }
  0x3b   : > { %2141 = vset.pattern.permute.xlu1 %v2284_v1  ;;  %476 = vrot.lane.b32.xlu0 %v2432_v2, %s2285_s25  ;;  %v2446_v6 = vld [vmem:[%s2413_s29] ss:$12 sps:$4 sm:$0xff]   ;;  %s2286_s26 = smov 126   ;;  %v2151_v9 = vld [vmem:[%s2413_s29 + $0x8] ss:$12 sps:$4 sm:$0xff]   ;;  %s2287_s27 = smov 110  }
  0x3c   : > { %354 = vmatprep.subr.bf16.mxu0 %v2432_v2  ;;  %474 = vrot.lane.b32.xlu1 %v2435_v3, %s2285_s25  ;;  %v2150_v8 = vld [vmem:[%s2413_s29 + $0x20] ss:$12 sps:$4 sm:$0xff]   ;;  %v2165_v12 = vld [vmem:[%s2413_s29 + $0x8] ss:$12 sps:$4 sm:$0xff]   ;;  %s2288_s16 = smov 109   ;;  %s2289_s28 = smov 108  }
  0x3d   : > { %355 = vmatpush1.bf16.msra.mxu0 %v2435_v3  ;;  %v2164_v10 = vld [vmem:[%s2413_s29 + $0x20] ss:$12 sps:$4 sm:$0xff]   ;;  %v2153_v14 = vld [vmem:[%s2413_s29 + $0x8] ss:$12 sps:$4 sm:$0xff]   ;;  %s2290_s30 = smov 92   ;;  %s2291_s7 = smov 91  }
  0x3e   : > { %356 = vmatprep.subr.bf16.mxu0 %v2442_v5  ;;  %v305_v11 = vld [vmem:[#allocation5] sm:$0xf]  ;;  %1978 = vmatpush3.bf16.msra.mxu1 %v2164_v10  ;;  %v2155_v16 = vld [vmem:[%s2413_s29 + $0x8] ss:$12 sps:$4 sm:$0xff]   ;;  %s2292_s8 = smov 90   ;;  %vm480_vm2 = vcmask 1039360  }
  0x3f   : > { %478 = vrot.lane.b32.xlu0 %v2145_v4, %s2285_s25  ;;  %1979 = vmatprep.subr.bf16.mxu1 %v2282_v0  ;;  %v2152_v13 = vld [vmem:[%s2413_s29 + $0x20] ss:$12 sps:$4 sm:$0xff]   ;;  %v2157_v18 = vld [vmem:[%s2413_s29 + $0x8] ss:$12 sps:$4 sm:$0xff]   ;;  %vm632_vm3 = vcmask 1031168   ;;  %vm784_vm4 = vcmask 900096  }
  0x40   : > { %470 = vrot.lane.b32.xlu1 %v2442_v5, %s2285_s25  ;;  %v2154_v15 = vld [vmem:[%s2413_s29 + $0x20] ss:$12 sps:$4 sm:$0xff]   ;;  %v2159_v20 = vld [vmem:[%s2413_s29 + $0x8] ss:$12 sps:$4 sm:$0xff]   ;;  %vm936_vm5 = vcmask 891904   ;;  %vm1088_vm6 = vcmask 883712  }
  0x41   : > { %357 = vmatpush1.bf16.msra.mxu0 %v2446_v6  ;;  %v2156_v17 = vld [vmem:[%s2413_s29 + $0x20] ss:$12 sps:$4 sm:$0xff]   ;;  %v2161_v22 = vld [vmem:[%s2413_s29 + $0x8] ss:$12 sps:$4 sm:$0xff]   ;;  %vm1240_vm7 = vcmask 752640   ;;  %vm1392_vm8 = vcmask 744448  }
  0x42   : > { %1980 = vmatpush3.bf16.msra.mxu1 %v2165_v12  ;;  %v2158_v19 = vld [vmem:[%s2413_s29 + $0x20] ss:$12 sps:$4 sm:$0xff]   ;;  %v2163_v24 = vld [vmem:[%s2413_s29 + $0x8] ss:$12 sps:$4 sm:$0xff]   ;;  %vm1544_vm9 = vcmask 736256   ;;  %vm1677_vm10 = vcmask 1043456  }
  0x43   : > { %472 = vrot.lane.b32.xlu0 %v2148_v7, %s2285_s25  ;;  %1985 = vmatprep.subr.bf16.mxu1 %v2282_v0  ;;  %v2160_v21 = vld [vmem:[%s2413_s29 + $0x20] ss:$12 sps:$4 sm:$0xff]   ;;  %v441_v35 = vld [vmem:[#allocation5 + $0x4] sm:$0xf]  ;;  %v593_v46 = vld [vmem:[#allocation5 + $0x8] sm:$0xf] }
  0x44   : > { %468 = vrot.lane.b32.xlu1 %v2446_v6, %s2285_s25  ;;  %1877 = vmatmul.mubr.msk.bf16.vlgmr.msra.gmra.mxu0 %vm292_vm0, %v305_v11  ;;  %v2162_v23 = vld [vmem:[%s2413_s29 + $0x20] ss:$12 sps:$4 sm:$0xff]   ;;  %vm1673_vm11 = vcmask 64512   ;;  %p280_p1 = scmp.lt.s32.totalorder %s2266_s21, 1  ;;  %vm1770_vm12 = vcmask 259072  }
  0x45   : > { %526 = vmatprep.mubr.bf16.mxu0 %v2284_v1  ;;  %1982 = vmatmul.mubr.msk.bf16.vlgmr.msra.gmra.mxu1 %vm292_vm0, %v305_v11  ;;  %v1651_v25 = vld [vmem:[%s2637_s2] sm:$0xff] }
  0x46   : > { %1989 = vmatprep.mubr.msk.bf16.mxu1 %vm2283_vm1, %v2282_v0  ;;  %v745_v57 = vld [vmem:[#allocation5 + $0xc] sm:$0xf]  ;;  %s2654_s21 = smov (!%p280_p1, %s2266_s21), 1 }
  0x47   : > { %628 = vrot.lane.b32.xlu0 %v2432_v2, %s2286_s26  ;;  %s2058_s14 = smul.u32 24, %s2654_s21 }
  0x48   : > { %630 = vrot.lane.b32.xlu1 %v2150_v8, %s2286_s26 }
  0x49   : > { %s284_s29 = scalar_lea.vmem %s2640_s5, %s2058_s14 }
  0x4b   : > { %626 = vrot.lane.b32.xlu0 %v2435_v3, %s2286_s26 }
  0x4c   : > { %622 = vrot.lane.b32.xlu1 %v2442_v5, %s2286_s26 }
  0x4f   : > { %624 = vrot.lane.b32.xlu0 %v2151_v9, %s2286_s26 }
  0x50   : > { %620 = vrot.lane.b32.xlu1 %v2446_v6, %s2286_s26 }
  0x53   : > { %780 = vrot.lane.b32.xlu0 %v2432_v2, %s2287_s27 }
  0x54   : > { %782 = vrot.lane.b32.xlu1 %v2152_v13, %s2287_s27 }
  0x57   : > { %778 = vrot.lane.b32.xlu0 %v2435_v3, %s2287_s27 }
  0x58   : > { %774 = vrot.lane.b32.xlu1 %v2442_v5, %s2287_s27 }
  0x5b   : > { %776 = vrot.lane.b32.xlu0 %v2153_v14, %s2287_s27 }
  0x5c   : > { %772 = vrot.lane.b32.xlu1 %v2446_v6, %s2287_s27 }
  0x5f   : > { %932 = vrot.lane.b32.xlu0 %v2432_v2, %s2288_s16 }
  0x60   : > { %934 = vrot.lane.b32.xlu1 %v2154_v15, %s2288_s16 }
  0x63   : > { %930 = vrot.lane.b32.xlu0 %v2435_v3, %s2288_s16 }
  0x64   : > { %926 = vrot.lane.b32.xlu1 %v2442_v5, %s2288_s16 }
  0x67   : > { %928 = vrot.lane.b32.xlu0 %v2155_v16, %s2288_s16 }
  0x68   : > { %924 = vrot.lane.b32.xlu1 %v2446_v6, %s2288_s16 }
  0x6b   : > { %1084 = vrot.lane.b32.xlu0 %v2432_v2, %s2289_s28 }
  0x6c   : > { %1086 = vrot.lane.b32.xlu1 %v2156_v17, %s2289_s28  ;;  %v1049_v17 = vld [vmem:[#allocation5 + $0x14] sm:$0xf] }
  0x6f   : > { %1082 = vrot.lane.b32.xlu0 %v2435_v3, %s2289_s28 }
  0x70   : > { %1078 = vrot.lane.b32.xlu1 %v2442_v5, %s2289_s28 }
  0x73   : > { %1080 = vrot.lane.b32.xlu0 %v2157_v18, %s2289_s28 }
  0x74   : > { %1076 = vrot.lane.b32.xlu1 %v2446_v6, %s2289_s28 }
  0x77   : > { %1236 = vrot.lane.b32.xlu0 %v2432_v2, %s2290_s30 }
  0x78   : > { %1238 = vrot.lane.b32.xlu1 %v2158_v19, %s2290_s30 }
  0x7b   : > { %1234 = vrot.lane.b32.xlu0 %v2435_v3, %s2290_s30 }
  0x7c   : > { %1230 = vrot.lane.b32.xlu1 %v2442_v5, %s2290_s30 }
  0x7f   : > { %1232 = vrot.lane.b32.xlu0 %v2159_v20, %s2290_s30 }
  0x80   : > { %1228 = vrot.lane.b32.xlu1 %v2446_v6, %s2290_s30 }
  0x83   : > { %1388 = vrot.lane.b32.xlu0 %v2432_v2, %s2291_s7 }
  0x84   : > { %1390 = vrot.lane.b32.xlu1 %v2160_v21, %s2291_s7 }
  0x87   : > { %1386 = vrot.lane.b32.xlu0 %v2435_v3, %s2291_s7 }
  0x88   : > { %1382 = vrot.lane.b32.xlu1 %v2442_v5, %s2291_s7 }
  0x8b   : > { %1384 = vrot.lane.b32.xlu0 %v2161_v22, %s2291_s7 }
  0x8c   : > { %1380 = vrot.lane.b32.xlu1 %v2446_v6, %s2291_s7 }
  0x8f   : > { %1540 = vrot.lane.b32.xlu0 %v2432_v2, %s2292_s8 }
  0x90   : > { %1542 = vrot.lane.b32.xlu1 %v2162_v23, %s2292_s8 }
  0x93   : > { %1538 = vrot.lane.b32.xlu0 %v2435_v3, %s2292_s8 }
  0x94   : > { %1534 = vrot.lane.b32.xlu1 %v2442_v5, %s2292_s8 }
  0x97   : > { %1536 = vrot.lane.b32.xlu0 %v2163_v24, %s2292_s8 }
  0x98   : > { %1532 = vrot.lane.b32.xlu1 %v2446_v6, %s2292_s8  ;;  %v897_v6 = vld [vmem:[#allocation5 + $0x10] sm:$0xf] }
  0x9b   : > { %1654 = vperm.xlu0 %2140, %v1651_v25  }
  0xad   : > { %v477_v26 = vpop.permute.xlu0 %476 }
  0xae   : > { %v475_v27 = vpop.permute.xlu1 %474 }
  0xaf   : > { %v483_v31 = vsel %vm480_vm2, %v475_v27, %v477_v26 }
  0xb1   : > { %v479_v28 = vpop.permute.xlu0 %478 }
  0xb2   : > { %v471_v29 = vpop.permute.xlu1 %470  ;;  %1986 = vmatpush3.bf16.msra.mxu1 %v479_v28  ;;  %v484_v30 = vsel %vm480_vm2, %v477_v26, %v479_v28  ;;  %v1201_v28 = vld [vmem:[#allocation5 + $0x18] sm:$0xf] }
  0xb3   : > { %506 = vmatprep.subr.bf16.mxu0 %v484_v30  ;;  %1987 = vmatprep.subr.bf16.mxu1 %v2282_v0 }
  0xb4   : > { %507 = vmatpush1.bf16.msra.mxu0 %v483_v31 }
  0xb5   : > { %v473_v32 = vpop.permute.xlu0 %472 }
  0xb6   : > { %v469_v33 = vpop.permute.xlu1 %468  ;;  %1988 = vmatpush3.bf16.msra.mxu1 %v473_v32  ;;  %v482_v34 = vsel %vm480_vm2, %v471_v29, %v473_v32 }
  0xb7   : > { %v481_v36 = vsel %vm480_vm2, %v469_v33, %v471_v29  ;;  %508 = vmatprep.subr.bf16.mxu0 %v482_v34  ;;  %1993 = vmatprep.subr.bf16.mxu1 %v2282_v0 }
  0xb8   : > { %509 = vmatpush1.bf16.msra.mxu0 %v481_v36 }
  0xb9   : > { %v629_v37 = vpop.permute.xlu0 %628  ;;  %1990 = vmatmul.mubr.msk.bf16.vlgmr.msra.gmra.mxu1 %vm292_vm0, %v441_v35 }
  0xba   : > { %v631_v38 = vpop.permute.xlu1 %630  ;;  %1997 = vmatprep.mubr.msk.bf16.mxu1 %vm2283_vm1, %v2282_v0 }
  0xbb   : > { %v636_v39 = vsel %vm632_vm3, %v629_v37, %v631_v38  ;;  %1994 = vmatpush3.bf16.msra.mxu1 %v631_v38  ;;  %1885 = vmatmul.mubr.msk.bf16.vlgmr.msra.gmra.mxu0 %vm292_vm0, %v441_v35 }
  0xbc   : > { %658 = vmatprep.subr.bf16.mxu0 %v636_v39  ;;  %1995 = vmatprep.subr.bf16.mxu1 %v2282_v0  ;;  %v1353_v39 = vld [vmem:[#allocation5 + $0x1c] sm:$0xf] }
  0xbd   : > { %v627_v40 = vpop.permute.xlu0 %626  ;;  %678 = vmatprep.mubr.bf16.mxu0 %v2284_v1 }
  0xbe   : > { %v635_v41 = vsel %vm632_vm3, %v627_v40, %v629_v37  ;;  %v623_v42 = vpop.permute.xlu1 %622 }
  0xbf   : > { %659 = vmatpush1.bf16.msra.mxu0 %v635_v41 }
  0xc1   : > { %v625_v43 = vpop.permute.xlu0 %624 }
  0xc2   : > { %v621_v44 = vpop.permute.xlu1 %620  ;;  %1996 = vmatpush3.bf16.msra.mxu1 %v625_v43  ;;  %v634_v45 = vsel %vm632_vm3, %v623_v42, %v625_v43 }
  0xc3   : > { %v633_v47 = vsel %vm632_vm3, %v621_v44, %v623_v42  ;;  %660 = vmatprep.subr.bf16.mxu0 %v634_v45  ;;  %2001 = vmatprep.subr.bf16.mxu1 %v2282_v0 }
  0xc4   : > { %661 = vmatpush1.bf16.msra.mxu0 %v633_v47 }
  0xc5   : > { %v781_v48 = vpop.permute.xlu0 %780  ;;  %1998 = vmatmul.mubr.msk.bf16.vlgmr.msra.gmra.mxu1 %vm292_vm0, %v593_v46 }
  0xc6   : > { %v783_v49 = vpop.permute.xlu1 %782  ;;  %2005 = vmatprep.mubr.msk.bf16.mxu1 %vm2283_vm1, %v2282_v0 }
  0xc7   : > { %v788_v50 = vsel %vm784_vm4, %v781_v48, %v783_v49  ;;  %2002 = vmatpush3.bf16.msra.mxu1 %v783_v49  ;;  %1893 = vmatmul.mubr.msk.bf16.vlgmr.msra.gmra.mxu0 %vm292_vm0, %v593_v46 }
  0xc8   : > { %810 = vmatprep.subr.bf16.mxu0 %v788_v50  ;;  %2003 = vmatprep.subr.bf16.mxu1 %v2282_v0  ;;  %v1505_v50 = vld [vmem:[#allocation5 + $0x20] sm:$0xf] }
  0xc9   : > { %v779_v51 = vpop.permute.xlu0 %778  ;;  %830 = vmatprep.mubr.bf16.mxu0 %v2284_v1 }
  0xca   : > { %v787_v52 = vsel %vm784_vm4, %v779_v51, %v781_v48  ;;  %v775_v53 = vpop.permute.xlu1 %774 }
  0xcb   : > { %811 = vmatpush1.bf16.msra.mxu0 %v787_v52 }
  0xcd   : > { %v777_v54 = vpop.permute.xlu0 %776 }
  0xce   : > { %v773_v55 = vpop.permute.xlu1 %772  ;;  %2004 = vmatpush3.bf16.msra.mxu1 %v777_v54  ;;  %v786_v56 = vsel %vm784_vm4, %v775_v53, %v777_v54 }
  0xcf   : > { %v785_v58 = vsel %vm784_vm4, %v773_v55, %v775_v53  ;;  %812 = vmatprep.subr.bf16.mxu0 %v786_v56  ;;  %2009 = vmatprep.subr.bf16.mxu1 %v2282_v0  ;;  %v304_v55 = vld [vmem:[#allocation2 + $0x10] sm:$0xff] }
  0xd0   : > { %813 = vmatpush1.bf16.msra.mxu0 %v785_v58 }
  0xd1   : > { %v933_v59 = vpop.permute.xlu0 %932  ;;  %2006 = vmatmul.mubr.msk.bf16.vlgmr.msra.gmra.mxu1 %vm292_vm0, %v745_v57 }
  0xd2   : > { %v935_v60 = vpop.permute.xlu1 %934  ;;  %2013 = vmatprep.mubr.msk.bf16.mxu1 %vm2283_vm1, %v2282_v0 }
  0xd3   : > { %v940_v61 = vsel %vm936_vm5, %v933_v59, %v935_v60  ;;  %2010 = vmatpush3.bf16.msra.mxu1 %v935_v60  ;;  %1901 = vmatmul.mubr.msk.bf16.vlgmr.msra.gmra.mxu0 %vm292_vm0, %v745_v57 }
  0xd4   : > { %962 = vmatprep.subr.bf16.mxu0 %v940_v61  ;;  %2011 = vmatprep.subr.bf16.mxu1 %v2282_v0 }
  0xd5   : > { %v931_v62 = vpop.permute.xlu0 %930  ;;  %982 = vmatprep.mubr.bf16.mxu0 %v2284_v1 }
  0xd6   : > { %v939_v63 = vsel %vm936_vm5, %v931_v62, %v933_v59  ;;  %v927_v2 = vpop.permute.xlu1 %926  ;;  %v1667_v62 = vld [vmem:[%s2639_s4] sm:$0x3f] }
  0xd7   : > { %963 = vmatpush1.bf16.msra.mxu0 %v939_v63  ;;  %1670 = vperm.xlu1 %2141, %v1667_v62  }
  0xd9   : > { %v929_v3 = vpop.permute.xlu0 %928 }
  0xda   : > { %v925_v4 = vpop.permute.xlu1 %924  ;;  %2012 = vmatpush3.bf16.msra.mxu1 %v929_v3  ;;  %v938_v5 = vsel %vm936_vm5, %v927_v2, %v929_v3 }
  0xdb   : > { %v937_v7 = vsel %vm936_vm5, %v925_v4, %v927_v2  ;;  %964 = vmatprep.subr.bf16.mxu0 %v938_v5  ;;  %2017 = vmatprep.subr.bf16.mxu1 %v2282_v0 }
  0xdc   : > { %965 = vmatpush1.bf16.msra.mxu0 %v937_v7 }
  0xdd   : > { %v1085_v8 = vpop.permute.xlu0 %1084  ;;  %2014 = vmatmul.mubr.msk.bf16.vlgmr.msra.gmra.mxu1 %vm292_vm0, %v897_v6 }
  0xde   : > { %v1087_v9 = vpop.permute.xlu1 %1086  ;;  %2021 = vmatprep.mubr.msk.bf16.mxu1 %vm2283_vm1, %v2282_v0 }
  0xdf   : > { %v1092_v10 = vsel %vm1088_vm6, %v1085_v8, %v1087_v9  ;;  %2018 = vmatpush3.bf16.msra.mxu1 %v1087_v9  ;;  %1909 = vmatmul.mubr.msk.bf16.vlgmr.msra.gmra.mxu0 %vm292_vm0, %v897_v6 }
  0xe0   : > { %1114 = vmatprep.subr.bf16.mxu0 %v1092_v10  ;;  %2019 = vmatprep.subr.bf16.mxu1 %v2282_v0 }
  0xe1   : > { %v1083_v11 = vpop.permute.xlu0 %1082  ;;  %1134 = vmatprep.mubr.bf16.mxu0 %v2284_v1 }
  0xe2   : > { %v1091_v12 = vsel %vm1088_vm6, %v1083_v11, %v1085_v8  ;;  %v1079_v13 = vpop.permute.xlu1 %1078 }
  0xe3   : > { %1115 = vmatpush1.bf16.msra.mxu0 %v1091_v12 }
  0xe5   : > { %v1081_v14 = vpop.permute.xlu0 %1080 }
  0xe6   : > { %v1077_v15 = vpop.permute.xlu1 %1076  ;;  %2020 = vmatpush3.bf16.msra.mxu1 %v1081_v14  ;;  %v1090_v16 = vsel %vm1088_vm6, %v1079_v13, %v1081_v14 }
  0xe7   : > { %v1089_v18 = vsel %vm1088_vm6, %v1077_v15, %v1079_v13  ;;  %1116 = vmatprep.subr.bf16.mxu0 %v1090_v16  ;;  %2025 = vmatprep.subr.bf16.mxu1 %v2282_v0 }
  0xe8   : > { %1117 = vmatpush1.bf16.msra.mxu0 %v1089_v18 }
  0xe9   : > { %v1237_v19 = vpop.permute.xlu0 %1236  ;;  %2022 = vmatmul.mubr.msk.bf16.vlgmr.msra.gmra.mxu1 %vm292_vm0, %v1049_v17 }
  0xea   : > { %v1239_v20 = vpop.permute.xlu1 %1238  ;;  %2029 = vmatprep.mubr.msk.bf16.mxu1 %vm2283_vm1, %v2282_v0 }
  0xeb   : > { %1917 = vmatmul.mubr.msk.bf16.vlgmr.msra.gmra.mxu0 %vm292_vm0, %v1049_v17  ;;  %v1244_v21 = vsel %vm1240_vm7, %v1237_v19, %v1239_v20  ;;  %2026 = vmatpush3.bf16.msra.mxu1 %v1239_v20 }
  0xec   : > { %1266 = vmatprep.subr.bf16.mxu0 %v1244_v21  ;;  %2027 = vmatprep.subr.bf16.mxu1 %v2282_v0 }
  0xed   : > { %v1235_v22 = vpop.permute.xlu0 %1234  ;;  %1286 = vmatprep.mubr.bf16.mxu0 %v2284_v1 }
  0xee   : > { %v1243_v23 = vsel %vm1240_vm7, %v1235_v22, %v1237_v19  ;;  %v1231_v24 = vpop.permute.xlu1 %1230 }
  0xef   : > { %1267 = vmatpush1.bf16.msra.mxu0 %v1243_v23 }
  0xf1   : > { %v1233_v25 = vpop.permute.xlu0 %1232 }
  0xf2   : > { %v1229_v26 = vpop.permute.xlu1 %1228  ;;  %2028 = vmatpush3.bf16.msra.mxu1 %v1233_v25  ;;  %v1242_v27 = vsel %vm1240_vm7, %v1231_v24, %v1233_v25 }
  0xf3   : > { %v1241_v29 = vsel %vm1240_vm7, %v1229_v26, %v1231_v24  ;;  %1268 = vmatprep.subr.bf16.mxu0 %v1242_v27  ;;  %2033 = vmatprep.subr.bf16.mxu1 %v2282_v0 }
  0xf4   : > { %1269 = vmatpush1.bf16.msra.mxu0 %v1241_v29 }
  0xf5   : > { %v1389_v30 = vpop.permute.xlu0 %1388  ;;  %2030 = vmatmul.mubr.msk.bf16.vlgmr.msra.gmra.mxu1 %vm292_vm0, %v1201_v28 }
  0xf6   : > { %v1391_v31 = vpop.permute.xlu1 %1390  ;;  %2037 = vmatprep.mubr.msk.bf16.mxu1 %vm2283_vm1, %v2282_v0 }
  0xf7   : > { %1925 = vmatmul.mubr.msk.bf16.vlgmr.msra.gmra.mxu0 %vm292_vm0, %v1201_v28  ;;  %v1396_v32 = vsel %vm1392_vm8, %v1389_v30, %v1391_v31  ;;  %2034 = vmatpush3.bf16.msra.mxu1 %v1391_v31 }
  0xf8   : > { %1418 = vmatprep.subr.bf16.mxu0 %v1396_v32  ;;  %2035 = vmatprep.subr.bf16.mxu1 %v2282_v0 }
  0xf9   : > { %v1387_v33 = vpop.permute.xlu0 %1386  ;;  %1438 = vmatprep.mubr.bf16.mxu0 %v2284_v1 }
  0xfa   : > { %v1395_v34 = vsel %vm1392_vm8, %v1387_v33, %v1389_v30  ;;  %v1383_v35 = vpop.permute.xlu1 %1382 }
  0xfb   : > { %1419 = vmatpush1.bf16.msra.mxu0 %v1395_v34 }
  0xfd   : > { %v1385_v36 = vpop.permute.xlu0 %1384 }
  0xfe   : > { %v1381_v37 = vpop.permute.xlu1 %1380  ;;  %2036 = vmatpush3.bf16.msra.mxu1 %v1385_v36  ;;  %v1394_v38 = vsel %vm1392_vm8, %v1383_v35, %v1385_v36 }
  0xff   : > { %v1393_v40 = vsel %vm1392_vm8, %v1381_v37, %v1383_v35  ;;  %1420 = vmatprep.subr.bf16.mxu0 %v1394_v38  ;;  %2041 = vmatprep.subr.bf16.mxu1 %v2282_v0 }
 0x100   : > { %1421 = vmatpush1.bf16.msra.mxu0 %v1393_v40 }
 0x101   : > { %v1541_v41 = vpop.permute.xlu0 %1540  ;;  %2038 = vmatmul.mubr.msk.bf16.vlgmr.msra.gmra.mxu1 %vm292_vm0, %v1353_v39 }
 0x102   : > { %v1543_v42 = vpop.permute.xlu1 %1542  ;;  %2045 = vmatprep.mubr.msk.bf16.mxu1 %vm2283_vm1, %v2282_v0 }
 0x103   : > { %1933 = vmatmul.mubr.msk.bf16.vlgmr.msra.gmra.mxu0 %vm292_vm0, %v1353_v39  ;;  %v1548_v43 = vsel %vm1544_vm9, %v1541_v41, %v1543_v42  ;;  %2042 = vmatpush3.bf16.msra.mxu1 %v1543_v42 }
 0x104   : > { %1570 = vmatprep.subr.bf16.mxu0 %v1548_v43  ;;  %2043 = vmatprep.subr.bf16.mxu1 %v2282_v0  ;;  %v376_v52 = vpop.f32.mrf.mxu0 }
 0x105   : > { %v1539_v44 = vpop.permute.xlu0 %1538  ;;  %1590 = vmatprep.mubr.bf16.mxu0 %v2284_v1  ;;  %v417_v57 = vpop.f32.mrf.mxu1 }
 0x106   : > { %v1547_v45 = vsel %vm1544_vm9, %v1539_v44, %v1541_v41  ;;  %v1535_v46 = vpop.permute.xlu1 %1534  ;;  %v378_v53 = vpop.f32.mrf.mxu0  ;;  %v425_v58 = vadd.f32 %v417_v57, %v304_v55 }
 0x107   : > { %1571 = vmatpush1.bf16.msra.mxu0 %v1547_v45  ;;  %v1983_v59 = vpop.f32.mrf.mxu1 }
 0x108   : > { %v380_v54 = vpop.f32.mrf.mxu0  ;;  %428 = vst.msk [vmem:[#allocation2 + $0x10] sm:$0xff] %vm292_vm0, %v425_v58 }
 0x109   : > { %v1537_v47 = vpop.permute.xlu0 %1536  ;;  %v420_v60 = vpop.f32.mrf.mxu1 }
 0x10a   : > { %v1533_v48 = vpop.permute.xlu1 %1532  ;;  %2044 = vmatpush3.bf16.msra.mxu1 %v1537_v47  ;;  %v1546_v49 = vsel %vm1544_vm9, %v1535_v46, %v1537_v47  ;;  %v381_v56 = vpop.f32.mrf.mxu0 }
 0x10b   : > { %v1545_v51 = vsel %vm1544_vm9, %v1533_v48, %v1535_v46  ;;  %1572 = vmatprep.subr.bf16.mxu0 %v1546_v49  ;;  %2049 = vmatprep.subr.bf16.mxu1 %v2282_v0  ;;  %v1984_v61 = vpop.f32.mrf.mxu1 }
 0x10c   : > { %1573 = vmatpush1.bf16.msra.mxu0 %v1545_v51 }
 0x10d   : > { %2046 = vmatmul.mubr.msk.bf16.vlgmr.msra.gmra.mxu1 %vm292_vm0, %v1505_v50 }
 0x10e   : > { %2051 = vmatprep.mubr.msk.bf16.mxu1 %vm2283_vm1, %v2282_v0 }
 0x10f   : > { %1941 = vmatmul.mubr.msk.bf16.vlgmr.msra.gmra.mxu0 %vm292_vm0, %v1505_v50  ;;  %v439_v0 = vld [vmem:[#allocation2 + $0x10] sm:$0xff] }
 0x110   : > { %1719 = vmatprep.mubr.bf16.mxu0 %v2284_v1 }
 0x179   : > { %v569_v63 = vpop.f32.mrf.mxu1 }
 0x17a   : > { %v577_v2 = vadd.f32 %v569_v63, %v439_v0 }
 0x17b   : > { %v528_v3 = vpop.f32.mrf.mxu0  ;;  %v1991_v1 = vpop.f32.mrf.mxu1 }
 0x17c   : > { %v2595_v4 = vadd.f32 %v528_v3, %v376_v52  ;;  %580 = vst.msk [vmem:[#allocation2 + $0x10] sm:$0xff] %vm292_vm0, %v577_v2 }
 0x17d   : > { %v530_v5 = vpop.f32.mrf.mxu0  ;;  %v572_v6 = vpop.f32.mrf.mxu1 }
 0x17e   : > { %v2598_v7 = vadd.f32 %v530_v5, %v378_v53 }
 0x17f   : > { %v532_v8 = vpop.f32.mrf.mxu0  ;;  %v1992_v9 = vpop.f32.mrf.mxu1 }
 0x181   : > { %v533_v10 = vpop.f32.mrf.mxu0 }
 0x183   : > { %v591_v11 = vld [vmem:[#allocation2 + $0x10] sm:$0xff] }
 0x185   : > { %v721_v12 = vpop.f32.mrf.mxu1 }
 0x186   : > { %v729_v13 = vadd.f32 %v721_v12, %v591_v11 }
 0x187   : > { %v680_v14 = vpop.f32.mrf.mxu0  ;;  %v1999_v15 = vpop.f32.mrf.mxu1 }
 0x188   : > { %732 = vst.msk [vmem:[#allocation2 + $0x10] sm:$0xff] %vm292_vm0, %v729_v13  ;;  %v727_v0 = vadd.f32 %v680_v14, %v2595_v4 }
 0x189   : > { %v682_v16 = vpop.f32.mrf.mxu0  ;;  %v724_v17 = vpop.f32.mrf.mxu1 }
 0x18a   : > { %v728_v1 = vadd.f32 %v682_v16, %v2598_v7  ;;  %v1655_v7 = vpop.permute.xlu0 %1654 }
 0x18b   : > { %v684_v18 = vpop.f32.mrf.mxu0  ;;  %v2000_v19 = vpop.f32.mrf.mxu1 }
 0x18d   : > { %v685_v20 = vpop.f32.mrf.mxu0 }
 0x18f   : > { %v743_v21 = vld [vmem:[#allocation2 + $0x10] sm:$0xff] }
 0x191   : > { %v873_v22 = vpop.f32.mrf.mxu1 }
 0x192   : > { %v881_v23 = vadd.f32 %v873_v22, %v743_v21 }
 0x193   : > { %v832_v24 = vpop.f32.mrf.mxu0  ;;  %v2007_v25 = vpop.f32.mrf.mxu1 }
 0x194   : > { %884 = vst.msk [vmem:[#allocation2 + $0x10] sm:$0xff] %vm292_vm0, %v881_v23  ;;  %v879_v8 = vadd.f32 %v832_v24, %v727_v0 }
 0x195   : > { %v834_v26 = vpop.f32.mrf.mxu0  ;;  %v876_v27 = vpop.f32.mrf.mxu1 }
 0x196   : > { %v880_v11 = vadd.f32 %v834_v26, %v728_v1 }
 0x197   : > { %v836_v28 = vpop.f32.mrf.mxu0  ;;  %v2008_v29 = vpop.f32.mrf.mxu1 }
 0x199   : > { %v837_v30 = vpop.f32.mrf.mxu0 }
 0x19b   : > { %v895_v31 = vld [vmem:[#allocation2 + $0x10] sm:$0xff] }
 0x19d   : > { %v1025_v32 = vpop.f32.mrf.mxu1 }
 0x19e   : > { %v1033_v33 = vadd.f32 %v1025_v32, %v895_v31 }
 0x19f   : > { %v984_v34 = vpop.f32.mrf.mxu0  ;;  %v2015_v35 = vpop.f32.mrf.mxu1 }
 0x1a0   : > { %1036 = vst.msk [vmem:[#allocation2 + $0x10] sm:$0xff] %vm292_vm0, %v1033_v33  ;;  %v1031_v12 = vadd.f32 %v984_v34, %v879_v8 }
 0x1a1   : > { %v986_v36 = vpop.f32.mrf.mxu0  ;;  %v1028_v37 = vpop.f32.mrf.mxu1 }
 0x1a2   : > { %v1032_v15 = vadd.f32 %v986_v36, %v880_v11 }
 0x1a3   : > { %v988_v38 = vpop.f32.mrf.mxu0  ;;  %v2016_v39 = vpop.f32.mrf.mxu1 }
 0x1a5   : > { %v989_v40 = vpop.f32.mrf.mxu0 }
 0x1a7   : > { %v1047_v41 = vld [vmem:[#allocation2 + $0x10] sm:$0xff] }
 0x1a9   : > { %v1177_v42 = vpop.f32.mrf.mxu1 }
 0x1aa   : > { %v1185_v43 = vadd.f32 %v1177_v42, %v1047_v41  ;;  %v1663_v42 = vld [vmem:[%s2638_s3] sm:$0x7] }
 0x1ab   : > { %v1136_v44 = vpop.f32.mrf.mxu0  ;;  %v2023_v45 = vpop.f32.mrf.mxu1 }
 0x1ac   : > { %1188 = vst.msk [vmem:[#allocation2 + $0x10] sm:$0xff] %vm292_vm0, %v1185_v43  ;;  %v1183_v17 = vadd.f32 %v1136_v44, %v1031_v12  ;;  %v1671_v45 = vpop.permute.xlu1 %1670 }
 0x1ad   : > { %v1138_v46 = vpop.f32.mrf.mxu0  ;;  %v1180_v47 = vpop.f32.mrf.mxu1 }
 0x1ae   : > { %v1184_v19 = vadd.f32 %v1138_v46, %v1032_v15 }
 0x1af   : > { %v1140_v48 = vpop.f32.mrf.mxu0  ;;  %v2024_v49 = vpop.f32.mrf.mxu1 }
 0x1b1   : > { %v1141_v50 = vpop.f32.mrf.mxu0 }
 0x1b3   : > { %v1199_v51 = vld [vmem:[#allocation2 + $0x10] sm:$0xff] }
 0x1b5   : > { %v1329_v52 = vpop.f32.mrf.mxu1 }
 0x1b6   : > { %v1337_v53 = vadd.f32 %v1329_v52, %v1199_v51 }
 0x1b7   : > { %v1288_v54 = vpop.f32.mrf.mxu0  ;;  %v2031_v55 = vpop.f32.mrf.mxu1 }
 0x1b8   : > { %1340 = vst.msk [vmem:[#allocation2 + $0x10] sm:$0xff] %vm292_vm0, %v1337_v53  ;;  %v1335_v4 = vadd.f32 %v1288_v54, %v1183_v17 }
 0x1b9   : > { %v1290_v56 = vpop.f32.mrf.mxu0  ;;  %v1332_v57 = vpop.f32.mrf.mxu1 }
 0x1ba   : > { %v1336_v20 = vadd.f32 %v1290_v56, %v1184_v19 }
 0x1bb   : > { %v1292_v58 = vpop.f32.mrf.mxu0  ;;  %v2032_v59 = vpop.f32.mrf.mxu1 }
 0x1bd   : > { %v1293_v60 = vpop.f32.mrf.mxu0 }
 0x1bf   : > { %v1351_v61 = vld [vmem:[#allocation2 + $0x10] sm:$0xff] }
 0x1c1   : > { %v1481_v62 = vpop.f32.mrf.mxu1 }
 0x1c2   : > { %v1489_v63 = vadd.f32 %v1481_v62, %v1351_v61 }
 0x1c3   : > { %v1440_v2 = vpop.f32.mrf.mxu0  ;;  %v2039_v3 = vpop.f32.mrf.mxu1 }
 0x1c4   : > { %1492 = vst.msk [vmem:[#allocation2 + $0x10] sm:$0xff] %vm292_vm0, %v1489_v63  ;;  %v1487_v21 = vadd.f32 %v1440_v2, %v1335_v4 }
 0x1c5   : > { %v1442_v5 = vpop.f32.mrf.mxu0  ;;  %v1484_v6 = vpop.f32.mrf.mxu1 }
 0x1c6   : > { %v1488_v25 = vadd.f32 %v1442_v5, %v1336_v20 }
 0x1c7   : > { %v1444_v9 = vpop.f32.mrf.mxu0  ;;  %v2040_v10 = vpop.f32.mrf.mxu1 }
 0x1c9   : > { %v1445_v13 = vpop.f32.mrf.mxu0 }
 0x1cb   : > { %v1503_v18 = vld [vmem:[#allocation2 + $0x10] sm:$0xff] }
 0x1cd   : > { %v1633_v14 = vpop.f32.mrf.mxu1 }
 0x1ce   : > { %v1641_v22 = vadd.f32 %v1633_v14, %v1503_v18 }
 0x1cf   : > { %v1592_v16 = vpop.f32.mrf.mxu0  ;;  %v2047_v23 = vpop.f32.mrf.mxu1 }
 0x1d0   : > { %1644 = vst.msk [vmem:[#allocation2 + $0x10] sm:$0xff] %vm292_vm0, %v1641_v22  ;;  %v1639_v24 = vadd.f32 %v1592_v16, %v1487_v21 }
 0x1d1   : > { %v1594_v27 = vpop.f32.mrf.mxu0  ;;  %v1636_v26 = vpop.f32.mrf.mxu1 }
 0x1d2   : > { %v1640_v28 = vadd.f32 %v1594_v27, %v1488_v25  ;;  %v1657_v29 = vadd.f32 %v1655_v7, %v1639_v24 }
 0x1d3   : > { %v1596_v30 = vpop.f32.mrf.mxu0  ;;  %v2048_v31 = vpop.f32.mrf.mxu1 }
 0x1d4   : > { %v1658_v32 = vadd.f32 %v1655_v7, %v1640_v28  ;;  %v1660_v33 = vmax.f32 %v1657_v29, 0.0 }
 0x1d5   : > { %v1597_v34 = vpop.f32.mrf.mxu0 }
 0x1d6   : > { %v1661_v35 = vmax.f32 %v1658_v32, 0.0  ;;  %v1664_v36 = vpack.c.bf16 %v1660_v33, %v1660_v33 }
 0x1d7   : > { %v1650_v37 = vld [vmem:[#allocation2 + $0x10] sm:$0xff] }
 0x1d8   : > { %v1659_v38 = vadd.f32 %v1655_v7, %v1650_v37  ;;  %v1665_v39 = vpack.c.bf16 %v1661_v35, %v1661_v35  ;;  %v1679_v41 = vsel %vm1677_vm10, %v1664_v36, 0 }
 0x1da   : > { %v1662_v40 = vmax.f32 %v1659_v38, 0.0  ;;  %1943 = vmatprep.subr.msk.bf16.mxu0 %vm1677_vm10, %v1665_v39 }
 0x1db   : > { %1702 = vmatpush1.bf16.msra.mxu0 %v1679_v41 }
 0x1dc   : > { %v1666_v43 = vpack.c.bf16 %v1662_v40, %v1662_v40 }
 0x1de   : > { %v1685_v44 = vsel %vm1677_vm10, %v1666_v43, 0  ;;  %1944 = vmatmul.mubr.msk.bf16.vlgmr.msra.gmra.mxu0 %vm1673_vm11, %v1663_v42 }
 0x1df   : > { %2050 = vmatpush3.bf16.msra.mxu1 %v1685_v44 }
 0x1e2   : > { %2052 = vmatmul.mubr.msk.bf16.vlgmr.msra.gmra.mxu1 %vm1673_vm11, %v1663_v42 }
 0x29e   : > { %v1721_v46 = vpop.f32.mrf.mxu0 }
 0x29f   : > { %v1722_v47 = vadd.f32 %v1721_v46, %v1671_v45 }
 0x2a0   : > { %v1723_v48 = vpop.f32.mrf.mxu0 }
 0x2a1   : > { %v1724_v49 = vadd.f32 %v1723_v48, %v1671_v45  ;;  %1768 = vst [vmem:[%s284_s29] sm:$0x3f] %v1722_v47 }
 0x2a2   : > { %v1762_v50 = vpop.f32.mrf.mxu1  ;;  %v1725_v51 = vpop.f32.mrf.mxu0 }
 0x2a3   : > { %v1763_v52 = vadd.f32 %v1762_v50, %v1671_v45  ;;  %1769 = vst [vmem:[%s284_s29 + $0x8] sm:$0x3f] %v1724_v49 }
 0x2a4   : > { %v2053_v53 = vpop.f32.mrf.mxu1  ;;  %v1726_v54 = vpop.f32.mrf.mxu0 }
 0x2a5   : > { %1771 = vst.msk [vmem:[%s284_s29 + $0x10] sm:$0x3f] %vm1770_vm12, %v1763_v52 }
 0x2a6   : > { %v1765_v55 = vpop.f32.mrf.mxu1 }
 0x2a8   : > { %v2054_v56 = vpop.f32.mrf.mxu1 }
 0x2a9 PF: > { %s19_s23 = sadd.s32 1, %s2274_s23   ;;  %s2646_s18 = smov %s2258_s19 }
 0x2aa   : > { %p16_p4 = scmp.ge.s32.totalorder %s19_s23, 4   ;;  %s2647_s19 = smov %s2262_s20 }
 0x2ab   : > { %s2648_s20 = smov %s2400_s17  ;;  %s2649_s21 = smov %s2270_s22 }
 0x2ac   : > { %s2650_s22 = smov %s2652_s6  ;;  %18 = sbr.rel (!%p16_p4) target bundleno = 5 (0x5), region = 101 }
 0x2b1   :  { %1793 = vsyncpa [#allocation4], 1 }
 0x2b2   :  { %1795 = vsyncpa [#allocation4 + $0x1], 1 }
 0x2b3   :  { %1796 = vsyncpa [#allocation6], 1 }

</bundles_post_ra>
